<compile_context>
chip_gen: v5e
topology: v5e:2x2
jax: 0.10.0
libtpu: 0.0.40
codegen_flags: <defaults>
</compile_context>

<pallas_src>
import jax
import jax.numpy as jnp
from jax.experimental import pallas as pl
from jax.experimental.pallas import tpu as pltpu

EPS = 1e-5
KSIZE = 3


def _basic_block_kernel(x_ref, w1_ref, g1_ref, b1_ref,
                        w2_ref, g2_ref, b2_ref, o_ref, hpad_ref):
    # x_ref   : (N, L+2, C)  f32  channels-last input, L zero-padded by 1 each side
    # w*_ref  : (3*C, C)     bf16 conv weights, taps stacked along K (fused-K layout)
    # g*/b*   : (1, C)       f32  bn gamma / beta (zero in the padded lanes)
    # o_ref   : (N, L, C)    f32  output
    # hpad_ref: (N, L+2, C)  bf16 scratch holding the L-padded first-stage activation
    n, lp2, c = x_ref.shape
    l = lp2 - 2
    nl = n * l
    inv_nl = 1.0 / float(nl)

    def conv3(src_padded, w_ref):
        # src_padded: (N, L+2, C) bf16.  Lane-concat the three shifted taps and
        # run ONE (N*L, 3C) @ (3C, C) MXU matmul, bf16 in / f32 accumulate.
        a = jnp.concatenate(
            [src_padded[:, k:k + l, :] for k in range(KSIZE)], axis=-1)
        a = a.reshape(nl, KSIZE * c)
        y = jnp.dot(a, w_ref[...], preferred_element_type=jnp.float32)
        return y.reshape(n, l, c)

    def bn_fold(y, g_ref, b_ref):
        # Two-pass batch stats (mean, then variance of the centered values) over
        # the N*L rows, biased variance, folded into one scale/shift pass.
        y2d = y.reshape(nl, c)
        m = jnp.sum(y2d, axis=0, keepdims=True) * inv_nl       # (1, C)
        d = y2d - m
        v = jnp.sum(d * d, axis=0, keepdims=True) * inv_nl     # (1, C)
        scale = g_ref[...] * jax.lax.rsqrt(v + EPS)             # (1, C)
        shift = b_ref[...] - m * scale                          # (1, C)
        return y * scale.reshape(1, 1, c) + shift.reshape(1, 1, c)

    # Zero ONLY the two padding rows of the h scratch (the interior is fully
    # overwritten below); rows 0 and L+1 supply conv2's edge taps.
    zrow = jnp.zeros((n, 1, c), jnp.bfloat16)
    hpad_ref[:, 0:1, :] = zrow
    hpad_ref[:, l + 1:l + 2, :] = zrow

    # conv1 taps come straight from the (already L-padded) input block: 1 cast.
    xb = x_ref[...].astype(jnp.bfloat16)
    h = jnp.maximum(bn_fold(conv3(xb, w1_ref), g1_ref, b1_ref), 0.0)

    # conv2: single bf16 cast of h while writing it into the padded scratch.
    hpad_ref[:, 1:l + 1, :] = h.astype(jnp.bfloat16)
    y = bn_fold(conv3(hpad_ref[...], w2_ref), g2_ref, b2_ref)

    # Residual straight from the interior of the input block (exact f32 x).
    o_ref[...] = jnp.maximum(y + x_ref[:, 1:l + 1, :], 0.0).astype(o_ref.dtype)


def basic_block_1d(x_ncl, w1, g1, b1, w2, g2, b2):
    """x_ncl: (N, C, L) float32 (PyTorch Conv1d layout).
       w1, w2: (Cout, Cin, 3) (PyTorch Conv1d weight layout), Cin == Cout.
       g*/b*: (Cout,)."""
    n, c, l = x_ncl.shape
    cp = max(128, ((c + 127) // 128) * 128)   # lane-dense channel count

    # Layout glue: NCL -> NLC, zero-pad channels to a lane multiple and L by 1
    # on each side (provides conv1's padding so the kernel never copies x).
    x_nlc = jnp.transpose(x_ncl, (0, 2, 1)).astype(jnp.float32)
    x_p = jnp.pad(x_nlc, ((0, 0), (1, 1), (0, cp - c)))        # (N, L+2, Cp)

    def prep_w(w):  # (Cout, Cin, 3) -> (3*Cp_in, Cp_out) bf16, taps stacked on K
        wt = jnp.transpose(w, (2, 1, 0)).astype(jnp.float32)   # (3, Cin, Cout)
        wt = jnp.pad(wt, ((0, 0), (0, cp - c), (0, cp - c)))   # (3, Cp, Cp)
        return wt.reshape(KSIZE * cp, cp).astype(jnp.bfloat16)

    def prep_v(v):
        # NOTE: padded lanes MUST stay zero so BN's scale/shift collapse to 0
        # there and no garbage leaks into the real (sliced) channels.
        return jnp.pad(v.astype(jnp.float32), (0, cp - c)).reshape(1, cp)

    w1_p, w2_p = prep_w(w1), prep_w(w2)
    g1_p, b1_p, g2_p, b2_p = prep_v(g1), prep_v(b1), prep_v(g2), prep_v(b2)

    # Shape-derived VMEM budget (no grid -> no double-buffering), capped so the
    # same setting is legal on v7x (64 MiB / TensorCore).  On v5e/v6e this
    # could be raised toward ~112 MiB for larger whole-in-VMEM problems.
    footprint = (n * (l + 2) * cp * 4          # x block (f32)
                 + n * l * cp * 4              # output block (f32)
                 + n * (l + 2) * cp * 2        # h scratch (bf16)
                 + 2 * KSIZE * cp * cp * 2     # two fused-K weights (bf16)
                 + 4 * cp * 4)                 # gamma/beta vectors
    vmem_limit = int(min(48 * 1024 * 1024, max(16 * 1024 * 1024, 6 * footprint)))

    out_p = pl.pallas_call(
        _basic_block_kernel,
        out_shape=jax.ShapeDtypeStruct((n, l, cp), jnp.float32),
        # No grid: the whole (small) problem lives in VMEM as full-array blocks.
        scratch_shapes=[pltpu.VMEM((n, l + 2, cp), jnp.bfloat16)],
        compiler_params=pltpu.CompilerParams(vmem_limit_bytes=vmem_limit),
    )(x_p, w1_p, g1_p, b1_p, w2_p, g2_p, b2_p)

    # Slice off padded channels, back to (N, C, L).
    return jnp.transpose(out_p[:, :, :c], (0, 2, 1)).astype(x_ncl.dtype)


def _reference(x_ncl, w1, g1, b1, w2, g2, b2):
    """Pure-JAX reference mirroring the kernel's MXU precision (bf16 matmul
    operands, f32 accumulation); residual uses exact f32 x like PyTorch."""
    def conv1d_k3_p1(x_nlc, w_tio):  # x: (N,L,C), w: (3, Cin, Cout)
        xp = jnp.pad(x_nlc, ((0, 0), (1, 1), (0, 0)))
        ll = x_nlc.shape[1]
        out = 0.0
        for k in range(KSIZE):
            out = out + jnp.einsum('nlc,cd->nld',
                                   xp[:, k:k + ll, :].astype(jnp.bfloat16),
                                   w_tio[k].astype(jnp.bfloat16),
                                   preferred_element_type=jnp.float32)
        return out

    def bn(y, g, b):
        m = jnp.mean(y, axis=(0, 1), keepdims=True)
        v = jnp.mean((y - m) ** 2, axis=(0, 1), keepdims=True)
        return (y - m) * jax.lax.rsqrt(v + EPS) * g.reshape(1, 1, -1) + b.reshape(1, 1, -1)

    x = jnp.transpose(x_ncl, (0, 2, 1)).astype(jnp.float32)
    h = jnp.maximum(bn(conv1d_k3_p1(x, jnp.transpose(w1, (2, 1, 0))), g1, b1), 0.0)
    y = bn(conv1d_k3_p1(h, jnp.transpose(w2, (2, 1, 0))), g2, b2)
    return jnp.transpose(jnp.maximum(y + x, 0.0), (0, 2, 1))


if __name__ == "__main__":
    # small shapes: batch=2, planes=in_planes=8, length=16
    N, C, L = 2, 8, 16
    key = jax.random.PRNGKey(0)
    k_x, k_w1, k_w2, k_g1, k_g2, k_b1, k_b2 = jax.random.split(key, 7)

    x = jax.random.normal(k_x, (N, C, L), dtype=jnp.float32)
    w1 = 0.1 * jax.random.normal(k_w1, (C, C, KSIZE), dtype=jnp.float32)
    w2 = 0.1 * jax.random.normal(k_w2, (C, C, KSIZE), dtype=jnp.float32)
    g1 = 1.0 + 0.05 * jax.random.normal(k_g1, (C,), dtype=jnp.float32)
    b1 = 0.05 * jax.random.normal(k_b1, (C,), dtype=jnp.float32)
    g2 = 1.0 + 0.05 * jax.random.normal(k_g2, (C,), dtype=jnp.float32)
    b2 = 0.05 * jax.random.normal(k_b2, (C,), dtype=jnp.float32)

    out = jax.block_until_ready(basic_block_1d(x, w1, g1, b1, w2, g2, b2))
    ref = jax.block_until_ready(_reference(x, w1, g1, b1, w2, g2, b2))

    assert out.shape == (N, C, L)
    err = float(jnp.max(jnp.abs(out - ref)))
    assert err < 2e-2, f"kernel/reference mismatch: max abs err = {err}"

    print("KERNEL_OK")
</pallas_src>

<mosaic_0001>
module attributes {stable_mosaic.version = 11 : i64} {
  func.func @_basic_block_kernel(%arg0: memref<2x18x128xf32, #tpu.memory_space<vmem>>, %arg1: memref<384x128xbf16, #tpu.memory_space<vmem>>, %arg2: memref<1x128xf32, #tpu.memory_space<vmem>>, %arg3: memref<1x128xf32, #tpu.memory_space<vmem>>, %arg4: memref<384x128xbf16, #tpu.memory_space<vmem>>, %arg5: memref<1x128xf32, #tpu.memory_space<vmem>>, %arg6: memref<1x128xf32, #tpu.memory_space<vmem>>, %arg7: memref<2x16x128xf32, #tpu.memory_space<vmem>>, %arg8: memref<2x18x128xbf16, #tpu.memory_space<vmem>>) attributes {dimension_semantics = [], scalar_prefetch = 0 : i64, scratch_operands = 1 : i64, tpu.core_type = #tpu.core_type<tc>} {
    %cst = arith.constant 0.000000e+00 : bf16
    %0 = vector.broadcast %cst : bf16 to vector<2x1x128xbf16>
    %c0 = arith.constant 0 : index
    %c0_0 = arith.constant 0 : index
    %c0_1 = arith.constant 0 : index
    %1 = vector.load %arg8[%c0, %c0_0, %c0_1] : memref<2x18x128xbf16, #tpu.memory_space<vmem>>, vector<2x1x128xbf16>
    tpu.vector_store %arg8[%c0, %c0_0, %c0_1], %0 {strides = array<i32>} : memref<2x18x128xbf16, #tpu.memory_space<vmem>>, vector<2x1x128xbf16>,
    %c0_2 = arith.constant 0 : index
    %c17 = arith.constant 17 : index
    %c0_3 = arith.constant 0 : index
    %2 = vector.load %arg8[%c0_2, %c17, %c0_3] : memref<2x18x128xbf16, #tpu.memory_space<vmem>>, vector<2x1x128xbf16>
    tpu.vector_store %arg8[%c0_2, %c17, %c0_3], %0 {strides = array<i32>} : memref<2x18x128xbf16, #tpu.memory_space<vmem>>, vector<2x1x128xbf16>,
    %c0_4 = arith.constant 0 : index
    %c0_5 = arith.constant 0 : index
    %c0_6 = arith.constant 0 : index
    %3 = vector.load %arg0[%c0_4, %c0_5, %c0_6] : memref<2x18x128xf32, #tpu.memory_space<vmem>>, vector<2x18x128xf32>
    %4 = arith.truncf %3 : vector<2x18x128xf32> to vector<2x18x128xbf16>
    %5 = vector.extract_strided_slice %4 {offsets = [0, 0, 0], sizes = [2, 16, 128], strides = [1, 1, 1]} : vector<2x18x128xbf16> to vector<2x16x128xbf16>
    %6 = vector.extract_strided_slice %4 {offsets = [0, 1, 0], sizes = [2, 16, 128], strides = [1, 1, 1]} : vector<2x18x128xbf16> to vector<2x16x128xbf16>
    %7 = vector.extract_strided_slice %4 {offsets = [0, 2, 0], sizes = [2, 16, 128], strides = [1, 1, 1]} : vector<2x18x128xbf16> to vector<2x16x128xbf16>
    %8 = tpu.concatenate %5, %6, %7 in 2 : vector<2x16x128xbf16>, vector<2x16x128xbf16>, vector<2x16x128xbf16> -> vector<2x16x384xbf16>
    %9 = vector.shape_cast %8 : vector<2x16x384xbf16> to vector<32x384xbf16>
    %c0_7 = arith.constant 0 : index
    %c0_8 = arith.constant 0 : index
    %10 = vector.load %arg1[%c0_7, %c0_8] : memref<384x128xbf16, #tpu.memory_space<vmem>>, vector<384x128xbf16>
    %cst_9 = arith.constant dense<0.000000e+00> : vector<32x128xf32>
    %11 = tpu.matmul %9, %10, %cst_9 {dimension_numbers = #tpu.dot_dimension_numbers<[1], [0], [0], [1], [0, 0, 1, 1], [], []>} : vector<32x384xbf16>, vector<384x128xbf16>, vector<32x128xf32> -> vector<32x128xf32>
    %12 = vector.shape_cast %11 : vector<32x128xf32> to vector<2x16x128xf32>
    %13 = vector.shape_cast %12 : vector<2x16x128xf32> to vector<32x128xf32>
    %cst_10 = arith.constant dense<0.000000e+00> : vector<128xf32>
    %14 = vector.multi_reduction <add>, %13, %cst_10 [0] : vector<32x128xf32> to vector<128xf32>
    %15 = vector.shape_cast %14 : vector<128xf32> to vector<1x128xf32>
    %cst_11 = arith.constant 3.125000e-02 : f32
    %16 = vector.broadcast %cst_11 : f32 to vector<1x128xf32>
    %17 = arith.mulf %15, %16 : vector<1x128xf32>
    %18 = vector.broadcast %17 : vector<1x128xf32> to vector<32x128xf32>
    %19 = arith.subf %13, %18 : vector<32x128xf32>
    %20 = arith.mulf %19, %19 : vector<32x128xf32>
    %cst_12 = arith.constant dense<0.000000e+00> : vector<128xf32>
    %21 = vector.multi_reduction <add>, %20, %cst_12 [0] : vector<32x128xf32> to vector<128xf32>
    %22 = vector.shape_cast %21 : vector<128xf32> to vector<1x128xf32>
    %cst_13 = arith.constant 3.125000e-02 : f32
    %23 = vector.broadcast %cst_13 : f32 to vector<1x128xf32>
    %24 = arith.mulf %22, %23 : vector<1x128xf32>
    %c0_14 = arith.constant 0 : index
    %c0_15 = arith.constant 0 : index
    %25 = vector.load %arg2[%c0_14, %c0_15] : memref<1x128xf32, #tpu.memory_space<vmem>>, vector<1x128xf32>
    %cst_16 = arith.constant 9.99999974E-6 : f32
    %26 = vector.broadcast %cst_16 : f32 to vector<1x128xf32>
    %27 = arith.addf %24, %26 : vector<1x128xf32>
    %28 = math.rsqrt %27 : vector<1x128xf32>
    %29 = arith.mulf %25, %28 : vector<1x128xf32>
    %c0_17 = arith.constant 0 : index
    %c0_18 = arith.constant 0 : index
    %30 = vector.load %arg3[%c0_17, %c0_18] : memref<1x128xf32, #tpu.memory_space<vmem>>, vector<1x128xf32>
    %31 = arith.mulf %17, %29 : vector<1x128xf32>
    %32 = arith.subf %30, %31 : vector<1x128xf32>
    %33 = vector.shape_cast %29 : vector<1x128xf32> to vector<1x1x128xf32>
    %34 = vector.broadcast %33 : vector<1x1x128xf32> to vector<2x16x128xf32>
    %35 = arith.mulf %12, %34 : vector<2x16x128xf32>
    %36 = vector.shape_cast %32 : vector<1x128xf32> to vector<1x1x128xf32>
    %37 = vector.broadcast %36 : vector<1x1x128xf32> to vector<2x16x128xf32>
    %38 = arith.addf %35, %37 : vector<2x16x128xf32>
    %cst_19 = arith.constant 0.000000e+00 : f32
    %39 = vector.broadcast %cst_19 : f32 to vector<2x16x128xf32>
    %40 = arith.maximumf %38, %39 : vector<2x16x128xf32>
    %41 = arith.truncf %40 : vector<2x16x128xf32> to vector<2x16x128xbf16>
    %c0_20 = arith.constant 0 : index
    %c1 = arith.constant 1 : index
    %c0_21 = arith.constant 0 : index
    %42 = vector.load %arg8[%c0_20, %c1, %c0_21] : memref<2x18x128xbf16, #tpu.memory_space<vmem>>, vector<2x16x128xbf16>
    tpu.vector_store %arg8[%c0_20, %c1, %c0_21], %41 {strides = array<i32>} : memref<2x18x128xbf16, #tpu.memory_space<vmem>>, vector<2x16x128xbf16>,
    %c0_22 = arith.constant 0 : index
    %c0_23 = arith.constant 0 : index
    %c0_24 = arith.constant 0 : index
    %43 = vector.load %arg8[%c0_22, %c0_23, %c0_24] : memref<2x18x128xbf16, #tpu.memory_space<vmem>>, vector<2x18x128xbf16>
    %44 = vector.extract_strided_slice %43 {offsets = [0, 0, 0], sizes = [2, 16, 128], strides = [1, 1, 1]} : vector<2x18x128xbf16> to vector<2x16x128xbf16>
    %45 = vector.extract_strided_slice %43 {offsets = [0, 1, 0], sizes = [2, 16, 128], strides = [1, 1, 1]} : vector<2x18x128xbf16> to vector<2x16x128xbf16>
    %46 = vector.extract_strided_slice %43 {offsets = [0, 2, 0], sizes = [2, 16, 128], strides = [1, 1, 1]} : vector<2x18x128xbf16> to vector<2x16x128xbf16>
    %47 = tpu.concatenate %44, %45, %46 in 2 : vector<2x16x128xbf16>, vector<2x16x128xbf16>, vector<2x16x128xbf16> -> vector<2x16x384xbf16>
    %48 = vector.shape_cast %47 : vector<2x16x384xbf16> to vector<32x384xbf16>
    %c0_25 = arith.constant 0 : index
    %c0_26 = arith.constant 0 : index
    %49 = vector.load %arg4[%c0_25, %c0_26] : memref<384x128xbf16, #tpu.memory_space<vmem>>, vector<384x128xbf16>
    %cst_27 = arith.constant dense<0.000000e+00> : vector<32x128xf32>
    %50 = tpu.matmul %48, %49, %cst_27 {dimension_numbers = #tpu.dot_dimension_numbers<[1], [0], [0], [1], [0, 0, 1, 1], [], []>} : vector<32x384xbf16>, vector<384x128xbf16>, vector<32x128xf32> -> vector<32x128xf32>
    %51 = vector.shape_cast %50 : vector<32x128xf32> to vector<2x16x128xf32>
    %52 = vector.shape_cast %51 : vector<2x16x128xf32> to vector<32x128xf32>
    %cst_28 = arith.constant dense<0.000000e+00> : vector<128xf32>
    %53 = vector.multi_reduction <add>, %52, %cst_28 [0] : vector<32x128xf32> to vector<128xf32>
    %54 = vector.shape_cast %53 : vector<128xf32> to vector<1x128xf32>
    %cst_29 = arith.constant 3.125000e-02 : f32
    %55 = vector.broadcast %cst_29 : f32 to vector<1x128xf32>
    %56 = arith.mulf %54, %55 : vector<1x128xf32>
    %57 = vector.broadcast %56 : vector<1x128xf32> to vector<32x128xf32>
    %58 = arith.subf %52, %57 : vector<32x128xf32>
    %59 = arith.mulf %58, %58 : vector<32x128xf32>
    %cst_30 = arith.constant dense<0.000000e+00> : vector<128xf32>
    %60 = vector.multi_reduction <add>, %59, %cst_30 [0] : vector<32x128xf32> to vector<128xf32>
    %61 = vector.shape_cast %60 : vector<128xf32> to vector<1x128xf32>
    %cst_31 = arith.constant 3.125000e-02 : f32
    %62 = vector.broadcast %cst_31 : f32 to vector<1x128xf32>
    %63 = arith.mulf %61, %62 : vector<1x128xf32>
    %c0_32 = arith.constant 0 : index
    %c0_33 = arith.constant 0 : index
    %64 = vector.load %arg5[%c0_32, %c0_33] : memref<1x128xf32, #tpu.memory_space<vmem>>, vector<1x128xf32>
    %cst_34 = arith.constant 9.99999974E-6 : f32
    %65 = vector.broadcast %cst_34 : f32 to vector<1x128xf32>
    %66 = arith.addf %63, %65 : vector<1x128xf32>
    %67 = math.rsqrt %66 : vector<1x128xf32>
    %68 = arith.mulf %64, %67 : vector<1x128xf32>
    %c0_35 = arith.constant 0 : index
    %c0_36 = arith.constant 0 : index
    %69 = vector.load %arg6[%c0_35, %c0_36] : memref<1x128xf32, #tpu.memory_space<vmem>>, vector<1x128xf32>
    %70 = arith.mulf %56, %68 : vector<1x128xf32>
    %71 = arith.subf %69, %70 : vector<1x128xf32>
    %72 = vector.shape_cast %68 : vector<1x128xf32> to vector<1x1x128xf32>
    %73 = vector.broadcast %72 : vector<1x1x128xf32> to vector<2x16x128xf32>
    %74 = arith.mulf %51, %73 : vector<2x16x128xf32>
    %75 = vector.shape_cast %71 : vector<1x128xf32> to vector<1x1x128xf32>
    %76 = vector.broadcast %75 : vector<1x1x128xf32> to vector<2x16x128xf32>
    %77 = arith.addf %74, %76 : vector<2x16x128xf32>
    %c0_37 = arith.constant 0 : index
    %c1_38 = arith.constant 1 : index
    %c0_39 = arith.constant 0 : index
    %78 = vector.load %arg0[%c0_37, %c1_38, %c0_39] : memref<2x18x128xf32, #tpu.memory_space<vmem>>, vector<2x16x128xf32>
    %79 = arith.addf %77, %78 : vector<2x16x128xf32>
    %cst_40 = arith.constant 0.000000e+00 : f32
    %80 = vector.broadcast %cst_40 : f32 to vector<2x16x128xf32>
    %81 = arith.maximumf %79, %80 : vector<2x16x128xf32>
    %c0_41 = arith.constant 0 : index
    %c0_42 = arith.constant 0 : index
    %c0_43 = arith.constant 0 : index
    %82 = vector.load %arg7[%c0_41, %c0_42, %c0_43] : memref<2x16x128xf32, #tpu.memory_space<vmem>>, vector<2x16x128xf32>
    tpu.vector_store %arg7[%c0_41, %c0_42, %c0_43], %81 {strides = array<i32>} : memref<2x16x128xf32, #tpu.memory_space<vmem>>, vector<2x16x128xf32>,
    return
  }
}

</mosaic_0001>

<bundles_post_ra>
// kernel: tpu_custom_call.1
= control target key start
LH: loop header
LB: loop body
LE: loop exit
PB: predicated region body
PF: predicated region fallthrough
CT: control target
= control target key end

     0   :  { %12 = vsyncpa [#allocation4], 0  ;;  %s1465_s0 = inlined_call_operand.vmem [shape: f32[2,18,128], index: 0, kind: input, shape index: {}]   ;;  %s1466_s1 = inlined_call_operand.hbm [shape: bf16[384,128], index: 1, kind: input, shape index: {}]   ;;  %s1467_s2 = inlined_call_operand.vmem [shape: f32[1,128], index: 2, kind: input, shape index: {}]   ;;  %s1468_s3 = inlined_call_operand.vmem [shape: f32[1,128], index: 3, kind: input, shape index: {}]   ;;  %s1469_s4 = inlined_call_operand.hbm [shape: bf16[384,128], index: 4, kind: input, shape index: {}]   ;;  %s1470_s5 = inlined_call_operand.vmem [shape: f32[1,128], index: 5, kind: input, shape index: {}]   ;;  %s1471_s6 = inlined_call_operand.vmem [shape: f32[1,128], index: 6, kind: input, shape index: {}]   ;;  %s1472_s7 = inlined_call_operand.hbm [shape: f32[2,16,128], index: 7, kind: output, shape index: {}]  }
   0x1   :  { %13 = vsyncpa [#allocation7], 0 }
   0x2   :  { %14 = vsyncpa [#allocation5], 0  ;;  %s21_s26 = sshll.u32 %s1466_s1, 4  ;;  %s1272_s27 = smov [#allocation3]   ;;  %s22_s26 = int_to_ptr.hbm [resolvable:$true] %s21_s26 }
   0x3   :  { %s23_s28 = sshll.u32 %s1272_s27, 4  ;;  %s38_s8 = sshll.u32 %s1469_s4, 4  ;;  %s24_s28 = int_to_ptr.vmem [resolvable:$true] %s23_s28  ;;  %s39_s8 = int_to_ptr.hbm [resolvable:$true] %s38_s8 }
   0x4   :  { %s1273_s9 = smov 64   ;;  %s1274_s10 = smov 4  }
   0x5   :  { %29 = dma.hbm_to_vmem [thread:$0]  %s22_s26, 3072, %s24_s28, [#allocation4], %s1273_s9, %s1273_s9, %s1274_s10  }
   0x6   :  { %s1275_s11 = smov [#allocation6]  }
   0x7   :  { %s40_s12 = sshll.u32 %s1275_s11, 4  ;;  %s41_s12 = int_to_ptr.vmem [resolvable:$true] %s40_s12 }
   0x8   :  { %46 = dma.hbm_to_vmem [thread:$0]  %s39_s8, 3072, %s41_s12, [#allocation7], %s1273_s9, %s1273_s9, %s1274_s10  }
   0x9   :  { %1266 = dma.done.wait [#allocation4], 3072  }
   0xa   :  { %1267 = vsyncadd [#allocation4], 4294964224 }
   0xb   :  { %1268 = dma.done.wait [#allocation7], 3072  }
   0xc   :  { %1269 = vsyncadd [#allocation7], 4294964224  ;;  %v1124_v0 = vld [vmem:[#allocation3 + $0x38] sm:$0xff]  ;;  %v1123_v3 = vld [vmem:[#allocation3 + $0x30] sm:$0xff]  ;;  %vm107_vm0 = vsmask.f32 7424 }
   0xd   :  { %v1132_v1 = vld [vmem:[#allocation3 + $0x78] sm:$0xff]  ;;  %335 = vmatpush.bf16.msra.mxu0 %v1124_v0  ;;  %v1131_v4 = vld [vmem:[#allocation3 + $0x70] sm:$0xff]  ;;  %v1122_v6 = vld [vmem:[#allocation3 + $0x28] sm:$0xff]  ;;  %vm134_vm1 = vcmask 1046528   ;;  %vm60_vm2 = vcmask 1040384   ;;  %vm500_vm11 = vcmask 1043456  }
   0xe   :  { %v1140_v2 = vld [vmem:[#allocation3 + $0xb8] sm:$0xff]  ;;  %354 = vmatpush.bf16.msra.mxu1 %v1132_v1  ;;  %v1139_v5 = vld [vmem:[#allocation3 + $0xb0] sm:$0xff]  ;;  %v1130_v7 = vld [vmem:[#allocation3 + $0x68] sm:$0xff]  ;;  %vm61_vm3 = vsmask.f32 256  ;;  %s1276_s12 = smov [#allocation8]  }
   0xf   :  { %373 = vmatpush.bf16.msra.mxu2 %v1140_v2  ;;  %v1138_v8 = vld [vmem:[#allocation3 + $0xa8] sm:$0xff]  ;;  %v78_v10 = vld [vmem:[%s1465_s0 + $0x8] sm:$0xff]  ;;  %v79_v11 = vld [vmem:[%s1465_s0 + $0x10] sm:$0x3]  ;;  %vm69_vm5 = vsmask.f32 7938 }
  0x10   :  { %v77_v9 = vld [vmem:[%s1465_s0] sm:$0xff]  ;;  %v84_v13 = vpack.c.bf16 %v78_v10, %v78_v10  ;;  %v1121_v14 = vld [vmem:[#allocation3 + $0x20] sm:$0xff]  ;;  %v85_v16 = vpack.c.bf16 %v79_v11, %v79_v11  ;;  %v1120_v20 = vld [vmem:[#allocation3 + $0x18] sm:$0xff]  ;;  %vm458_vm10 = vsmask.f32 4368  ;;  %s901_s1 = sshll.u32 %s1276_s12, 4  ;;  %s902_s1 = int_to_ptr.vmem [resolvable:$true] %s901_s1 }
  0x11   :  { %336 = vmatpush.bf16.msra.mxu0 %v1123_v3  ;;  %v83_v12 = vpack.c.bf16 %v77_v9, %v77_v9  ;;  %v1129_v15 = vld [vmem:[#allocation3 + $0x60] sm:$0xff]  ;;  %v1128_v21 = vld [vmem:[#allocation3 + $0x58] sm:$0xff]  ;;  %v1119_v25 = vld [vmem:[#allocation3 + $0x10] sm:$0xff]  ;;  %s903_s14 = sshll.u32 %s1472_s7, 4  ;;  %s1278_s15 = smov 8   ;;  %s904_s14 = int_to_ptr.hbm [resolvable:$true] %s903_s14 }
  0x12   :  { %355 = vmatpush.bf16.msra.mxu1 %v1131_v4  ;;  %v1137_v17 = vld [vmem:[#allocation3 + $0xa0] sm:$0xff]  ;;  %v94_v19 = vunpack.c.l.b16 %v84_v13  ;;  %v103_v23 = vunpack.c.l.b16 %v85_v16  ;;  %v1136_v24 = vld [vmem:[#allocation3 + $0x98] sm:$0xff]  ;;  %v1127_v26 = vld [vmem:[#allocation3 + $0x50] sm:$0xff] }
  0x13   :  { %374 = vmatpush.bf16.msra.mxu2 %v1139_v5  ;;  %v93_v18 = vunpack.c.l.b16 %v83_v12  ;;  %v80_v29 = vld [vmem:[%s1465_s0 + $0x18] sm:$0xff]  ;;  %v1135_v30 = vld [vmem:[#allocation3 + $0x90] sm:$0xff]  ;;  %v81_v31 = vld [vmem:[%s1465_s0 + $0x20] sm:$0xff] }
  0x14   :  { %v105_v27 = vpack.c.b16 %v103_v23, %v103_v23  ;;  %v1118_v32 = vld [vmem:[#allocation3 + $0x8] sm:$0xff]  ;;  %v86_v33 = vpack.c.bf16 %v80_v29, %v80_v29  ;;  %v87_v38 = vpack.c.bf16 %v81_v31, %v81_v31  ;;  %v82_v39 = vld [vmem:[%s1465_s0 + $0x28] sm:$0x3]  ;;  %v1117_v42 = vld [vmem:[#allocation3] sm:$0xff] }
  0x15   :  { %337 = vmatpush.bf16.msra.mxu0 %v1122_v6  ;;  %v97_v22 = vpack.c.b16 %v94_v19, %v93_v18  ;;  %v1126_v34 = vld [vmem:[#allocation3 + $0x48] sm:$0xff]  ;;  %v88_v41 = vpack.c.bf16 %v82_v39, %v82_v39  ;;  %v1125_v43 = vld [vmem:[#allocation3 + $0x40] sm:$0xff]  ;;  %vm1348_vm4 = vmand %vm60_vm2, %vm61_vm3 }
  0x16   :  { %356 = vmatpush.bf16.msra.mxu1 %v1130_v7  ;;  %v116_v37 = vshll.u32 %v105_v27, 16  ;;  %v1134_v40 = vld [vmem:[#allocation3 + $0x88] sm:$0xff]  ;;  %v95_v46 = vunpack.c.l.b16 %v86_v33  ;;  %v96_v47 = vunpack.c.l.b16 %v87_v38  ;;  %v1133_v48 = vld [vmem:[#allocation3 + $0x80] sm:$0xff]  ;;  %v136_v50 = vrot.slane %v105_v27, 1  ;;  %v66_v4 = vld [vmem:[#allocation2 + $0xc] sm:$0x1] }
  0x17   :  { %375 = vmatpush.bf16.msra.mxu2 %v1138_v8  ;;  %v111_v28 = vshll.u32 %v97_v22, 16  ;;  %v109_v35 = vshrl.u32 %v97_v22, 16  ;;  %v135_v49 = vrot.slane %v97_v22, 1  ;;  %v104_v53 = vunpack.c.l.b16 %v88_v41  ;;  %v63_v2 = vld [vmem:[#allocation2] sm:$0x1]  ;;  %vm70_vm6 = vmand %vm60_vm2, %vm69_vm5 }
  0x18   :  { %v118_v45 = vrot.slane %v116_v37, 1  ;;  %v98_v52 = vpack.c.b16 %v96_v47, %v95_v46  ;;  %v71_v5 = vld [vmem:[#allocation2 + $0x8] sm:$0x1]  ;;  %v64_v6 = vsel %vm1348_vm4, 0, %v63_v2  ;;  %v67_v7 = vsel %vm1348_vm4, 0, %v66_v4  ;;  %v1147_v4 = vld [vmem:[#allocation6 + $0x20] sm:$0xff]  ;;  %vm1415_vm12 = vmor %vm61_vm3, %vm458_vm10 }
  0x19   :  { %338 = vmatpush.bf16.msra.mxu0 %v1121_v14  ;;  %v113_v36 = vrot.slane %v111_v28, 1  ;;  %v137_v54 = vsel %vm134_vm1, %v135_v49, %v136_v50  ;;  %v106_v55 = vpack.c.b16 %v104_v53, %v104_v53  ;;  %v74_v8 = vld [vmem:[#allocation2 + $0x14] sm:$0x1]  ;;  %65 = vst [vmem:[#allocation2] sm:$0x1] %v64_v6  ;;  %v72_v9 = vsel %vm70_vm6, 0, %v71_v5  ;;  %vm1420_vm13 = vmand %vm500_vm11, %vm69_vm5 }
  0x1a   :  { %357 = vmatpush.bf16.msra.mxu1 %v1129_v15  ;;  %v123_v56 = vshll.u32 %v98_v52, 16  ;;  %v121_v57 = vshrl.u32 %v98_v52, 16  ;;  %v138_v62 = vrot.slane %v98_v52, 1  ;;  %v75_v10 = vsel %vm70_vm6, 0, %v74_v8  ;;  %68 = vst [vmem:[#allocation2 + $0xc] sm:$0x1] %v67_v7 }
  0x1b   :  { %376 = vmatpush.bf16.msra.mxu2 %v1137_v17  ;;  %v114_v44 = vor.u32 %v113_v36, %v109_v35  ;;  %v128_v59 = vshll.u32 %v106_v55, 16  ;;  %v139_v63 = vrot.slane %v106_v55, 1  ;;  %73 = vst [vmem:[#allocation2 + $0x8] sm:$0x1] %v72_v9  ;;  %v1150_v55 = vld [vmem:[#allocation6 + $0x38] sm:$0xff]  ;;  %v1157_v2 = vld [vmem:[#allocation6 + $0x70] sm:$0xff] }
  0x1c   :  { %v125_v58 = vrot.slane %v123_v56, 1  ;;  %76 = vst [vmem:[#allocation2 + $0x14] sm:$0x1] %v75_v10  ;;  %766 = vmatpush.bf16.msra.mxu3 %v1150_v55  ;;  %v1382_v5 = vld [vmem:[#allocation6 + $0xa8] sm:$0xff]  ;;  %v1146_v7 = vld [vmem:[#allocation6 + $0x18] sm:$0xff]  ;;  %v1385_v10 = vld [vmem:[#allocation6 + $0xa0] sm:$0xff] }
  0x1d   :  { %339 = vmatpush.bf16.msra.mxu0 %v1120_v20  ;;  %v119_v51 = vsel %vm107_vm0, %v114_v44, %v118_v45  ;;  %v130_v61 = vrot.slane %v128_v59, 1  ;;  %v140_v1 = vsel %vm134_vm1, %v138_v62, %v139_v63  ;;  %v1158_v62 = vld [vmem:[#allocation6 + $0x78] sm:$0xff]  ;;  %v1148_v63 = vld [vmem:[#allocation6 + $0x28] sm:$0xff] }
  0x1e   :  { %358 = vmatpush.bf16.msra.mxu1 %v1128_v21  ;;  %v126_v60 = vor.u32 %v125_v58, %v121_v57  ;;  %v1149_v58 = vld [vmem:[#allocation6 + $0x30] sm:$0xff]  ;;  %v1156_v6 = vld [vmem:[#allocation6 + $0x68] sm:$0xff] }
  0x1f   :  { %377 = vmatpush.bf16.msra.mxu2 %v1136_v24 }
  0x20   :  { %v131_v0 = vsel %vm107_vm0, %v126_v60, %v130_v61  ;;  %767 = vmatpush.bf16.msra.mxu3 %v1149_v58  ;;  %v1166_v60 = vld [vmem:[#allocation6 + $0xb8] sm:$0xff] }
  0x21   :  { %340 = vmatpush.bf16.msra.mxu0 %v1119_v25 }
  0x22   :  { %359 = vmatpush.bf16.msra.mxu1 %v1127_v26 }
  0x23   :  { %378 = vmatpush.bf16.msra.mxu2 %v1135_v30 }
  0x24   :  { %768 = vmatpush.bf16.msra.mxu3 %v1148_v63 }
  0x25   :  { %341 = vmatpush.bf16.msra.mxu0 %v1118_v32 }
  0x26   :  { %360 = vmatpush.bf16.msra.mxu1 %v1126_v34 }
  0x27   :  { %379 = vmatpush.bf16.msra.mxu2 %v1134_v40 }
  0x28   :  { %769 = vmatpush.bf16.msra.mxu3 %v1147_v4 }
  0x29   :  { %342 = vmatpush.bf16.msra.mxu0 %v1117_v42 }
  0x2a   :  { %361 = vmatpush.bf16.msra.mxu1 %v1125_v43 }
  0x2b   :  { %380 = vmatpush.bf16.msra.mxu2 %v1133_v48 }
  0x2c   :  { %343 = vmatmul.bf16.vlgmr.msra.gmra.mxu0 %v97_v22  ;;  %770 = vmatpush.bf16.msra.mxu3 %v1146_v7 }
  0x2d   :  { %362 = vmatmul.bf16.vlgmr.msra.gmra.mxu1 %v119_v51  ;;  %785 = vmatpush.bf16.msrb.mxu0 %v1158_v62 }
  0x2e   :  { %381 = vmatmul.bf16.vlgmr.msra.gmra.mxu2 %v137_v54  ;;  %804 = vmatpush.bf16.msrb.mxu1 %v1166_v60 }
  0x2f   :  { %1167 = vmatpush.bf16.msrb.mxu2 %v1158_v62 }
  0x31   :  { %786 = vmatpush.bf16.msrb.mxu0 %v1157_v2 }
  0x33   :  { %1168 = vmatpush.bf16.msrb.mxu2 %v1157_v2  ;;  %v506_v2 = vld [vmem:[#allocation2 + $0x8] sm:$0x1] }
  0x35   :  { %787 = vmatpush.bf16.msrb.mxu0 %v1156_v6 }
  0x37   :  { %1169 = vmatpush.bf16.msrb.mxu2 %v1156_v6 }
  0x3c   :  { %348 = vmatmul.bf16.gmra.mxu0 %v98_v52 }
  0x3d   :  { %367 = vmatmul.bf16.gmra.mxu1 %v131_v0 }
  0x3e   :  { %386 = vmatmul.bf16.gmra.mxu2 %v140_v1  ;;  %v1379_v1 = vld [vmem:[#allocation6 + $0xb0] sm:$0xff] }
  0x3f   :  { %805 = vmatpush.bf16.msrb.mxu1 %v1379_v1 }
  0x43   :  { %806 = vmatpush.bf16.msrb.mxu1 %v1382_v5 }
  0x47   :  { %807 = vmatpush.bf16.msrb.mxu1 %v1385_v10 }
  0xa9   :  { %v344_v11 = vpop.f32.mrf.mxu0 }
  0xaa   :  { %v363_v12 = vpop.f32.mrf.mxu1 }
  0xab   :  { %v364_v20 = vadd.f32 %v363_v12, %v344_v11  ;;  %v1155_v11 = vld [vmem:[#allocation6 + $0x60] sm:$0xff]  ;;  %v1145_v12 = vld [vmem:[#allocation6 + $0x10] sm:$0xff] }
  0xac   :  { %788 = vmatpush.bf16.msrb.mxu0 %v1155_v11  ;;  %1170 = vmatpush.bf16.msrb.mxu2 %v1155_v11 }
  0xad   :  { %771 = vmatpush.bf16.msra.mxu3 %v1145_v12 }
  0xb1   :  { %v382_v13 = vpop.f32.mrf.mxu2  ;;  %v346_v14 = vpop.f32.mrf.mxu0 }
  0xb2   :  { %v365_v15 = vpop.f32.mrf.mxu1  ;;  %v1359_v26 = vadd.f32 %v382_v13, %v364_v20  ;;  %v1153_v20 = vld [vmem:[#allocation6 + $0x50] sm:$0xff] }
  0xb3   :  { %v366_v21 = vadd.f32 %v365_v15, %v346_v14  ;;  %v1388_v14 = vld [vmem:[#allocation6 + $0x98] sm:$0xff] }
  0xb4   :  { %808 = vmatpush.bf16.msrb.mxu1 %v1388_v14 }
  0xb9   :  { %v384_v16 = vpop.f32.mrf.mxu2  ;;  %v349_v17 = vpop.f32.mrf.mxu0 }
  0xba   :  { %v368_v18 = vpop.f32.mrf.mxu1  ;;  %v1357_v23 = vadd.f32 %v384_v16, %v366_v21  ;;  %v1154_v16 = vld [vmem:[#allocation6 + $0x58] sm:$0xff]  ;;  %v420_v21 = vld [vmem:[%s1467_s2] sm:$0x1] }
  0xbb   :  { %v369_v22 = vadd.f32 %v368_v18, %v349_v17  ;;  %v1144_v17 = vld [vmem:[#allocation6 + $0x8] sm:$0xff]  ;;  %789 = vmatpush.bf16.msrb.mxu0 %v1154_v16  ;;  %1171 = vmatpush.bf16.msrb.mxu2 %v1154_v16 }
  0xbc   :  { %v392_v28 = vadd.f32 %v1357_v23, %v1359_v26  ;;  %772 = vmatpush.bf16.msra.mxu3 %v1144_v17  ;;  %v513_v17 = vld [vmem:[#allocation2 + $0x14] sm:$0x1] }
  0xbf   :  { %790 = vmatpush.bf16.msrb.mxu0 %v1153_v20  ;;  %1172 = vmatpush.bf16.msrb.mxu2 %v1153_v20 }
  0xc1   :  { %v387_v19 = vpop.f32.mrf.mxu2  ;;  %v351_v24 = vpop.f32.mrf.mxu0 }
  0xc2   :  { %v370_v25 = vpop.f32.mrf.mxu1  ;;  %v1361_v27 = vadd.f32 %v387_v19, %v369_v22  ;;  %v1391_v19 = vld [vmem:[#allocation6 + $0x90] sm:$0xff] }
  0xc3   :  { %v371_v29 = vadd.f32 %v370_v25, %v351_v24  ;;  %v1143_v24 = vld [vmem:[#allocation6] sm:$0xff]  ;;  %809 = vmatpush.bf16.msrb.mxu1 %v1391_v19 }
  0xc4   :  { %v393_v31 = vadd.f32 %v392_v28, %v1361_v27  ;;  %v1397_v28 = vld [vmem:[#allocation6 + $0x88] sm:$0xff]  ;;  %773 = vmatpush.bf16.msra.mxu3 %v1143_v24 }
  0xc7   :  { %810 = vmatpush.bf16.msrb.mxu1 %v1397_v28 }
  0xc8   :  { %1175 = vmatpush.bf16.msrb.mxu3 %v1166_v60  ;;  %v502_v60 = vld [vmem:[#allocation2] sm:$0xf] }
  0xc9   :  { %v389_v30 = vpop.f32.mrf.mxu2 }
  0xca   :  { %v1366_v32 = vadd.f32 %v389_v30, %v371_v29  ;;  %v1152_v30 = vld [vmem:[#allocation6 + $0x48] sm:$0xff] }
  0xcb   :  { %791 = vmatpush.bf16.msrb.mxu0 %v1152_v30  ;;  %1173 = vmatpush.bf16.msrb.mxu2 %v1152_v30 }
  0xcc   :  { %v394_v33 = vadd.f32 %v393_v31, %v1366_v32  ;;  %v433_v31 = vld [vmem:[%s1468_s3] sm:$0x1]  ;;  %1176 = vmatpush.bf16.msrb.mxu3 %v1379_v1 }
  0xce   :  { %v395_v34 = vrot.slane %v394_v33, 4 }
  0xd0   :  { %v396_v35 = vadd.f32 %v395_v34, %v394_v33  ;;  %1177 = vmatpush.bf16.msrb.mxu3 %v1382_v5 }
  0xd2   :  { %v397_v36 = vrot.slane %v396_v35, 2 }
  0xd4   :  { %v398_v37 = vadd.f32 %v397_v36, %v396_v35  ;;  %v1404_v35 = vld [vmem:[#allocation6 + $0x80] sm:$0xff]  ;;  %1178 = vmatpush.bf16.msrb.mxu3 %v1385_v10 }
  0xd5   :  { %811 = vmatpush.bf16.msrb.mxu1 %v1404_v35 }
  0xd6   :  { %v399_v38 = vrot.slane %v398_v37, 1 }
  0xd8   :  { %v400_v39 = vadd.f32 %v399_v38, %v398_v37  ;;  %v1151_v37 = vld [vmem:[#allocation6 + $0x40] sm:$0xff]  ;;  %1179 = vmatpush.bf16.msrb.mxu3 %v1388_v14 }
  0xd9   :  { %792 = vmatpush.bf16.msrb.mxu0 %v1151_v37  ;;  %1174 = vmatpush.bf16.msrb.mxu2 %v1151_v37 }
  0xda   :  { %v1369_v40 = vmul.f32 0.03125, %v400_v39 }
  0xdc   :  { %v402_v41 = vsub.f32 %v1359_v26, %v1369_v40  ;;  %v403_v42 = vsub.f32 %v1357_v23, %v1369_v40  ;;  %v404_v43 = vsub.f32 %v1361_v27, %v1369_v40  ;;  %v405_v44 = vsub.f32 %v1366_v32, %v1369_v40  ;;  %1180 = vmatpush.bf16.msrb.mxu3 %v1391_v19 }
  0xde   :  { %v406_v45 = vmul.f32 %v402_v41, %v402_v41  ;;  %v407_v46 = vmul.f32 %v403_v42, %v403_v42  ;;  %v408_v47 = vmul.f32 %v404_v43, %v404_v43  ;;  %v409_v49 = vmul.f32 %v405_v44, %v405_v44 }
  0xe0   :  { %v410_v48 = vadd.f32 %v407_v46, %v406_v45  ;;  %1181 = vmatpush.bf16.msrb.mxu3 %v1397_v28 }
  0xe2   :  { %v411_v50 = vadd.f32 %v410_v48, %v408_v47 }
  0xe4   :  { %v412_v51 = vadd.f32 %v411_v50, %v409_v49  ;;  %1182 = vmatpush.bf16.msrb.mxu3 %v1404_v35 }
  0xe6   :  { %v413_v52 = vrot.slane %v412_v51, 4 }
  0xe8   :  { %v414_v53 = vadd.f32 %v413_v52, %v412_v51 }
  0xea   :  { %v415_v54 = vrot.slane %v414_v53, 2 }
  0xec   :  { %v416_v56 = vadd.f32 %v415_v54, %v414_v53 }
  0xee   :  { %v417_v57 = vrot.slane %v416_v56, 1 }
  0xf0   :  { %v418_v59 = vadd.f32 %v417_v57, %v416_v56 }
  0xf2   :  { %v419_v61 = vmul.f32 0.03125, %v418_v59 }
  0xf4   :  { %v421_v0 = vadd.f32 1e-05, %v419_v61 }
  0xf6   :  { %1190 = vrsqrt.f32 %v421_v0  ;;  %vm428_vm8 = vweird.f32 %v421_v0 }
  0xfc   :  { %v1191_v8 = vpop.eup %1190 }
  0xfd   :  { %v423_v9 = vmul.f32 %v1191_v8, %v421_v0  ;;  %vm429_vm7 = vweird.f32 %v1191_v8 }
  0xfe   :  { %vm430_vm9 = vmor %vm428_vm8, %vm429_vm7 }
  0xff   :  { %v424_v13 = vmul.f32 %v1191_v8, %v423_v9 }
 0x101   :  { %v425_v15 = vmul.f32 0.5, %v424_v13 }
 0x103   :  { %v426_v18 = vsub.f32 1.5, %v425_v15 }
 0x105   :  { %v427_v22 = vmul.f32 %v1191_v8, %v426_v18 }
 0x107   :  { %v431_v25 = vsel %vm430_vm9, %v1191_v8, %v427_v22  ;;  %v509_v8 = vld [vmem:[#allocation2 + $0xc] sm:$0xf] }
 0x108   :  { %v432_v29 = vmul.f32 %v431_v25, %v420_v21 }
 0x10a   :  { %v434_v33 = vmul.f32 %v432_v29, %v1369_v40  ;;  %v437_v34 = vperm.slane %v432_v29, 0 }
 0x10c   :  { %v435_v36 = vsub.f32 %v433_v31, %v434_v33  ;;  %v439_v38 = vmul.f32 %v437_v34, %v1359_v26  ;;  %v440_v39 = vmul.f32 %v437_v34, %v1357_v23  ;;  %v441_v41 = vmul.f32 %v437_v34, %v1361_v27 }
 0x10d   :  { %v442_v42 = vmul.f32 %v437_v34, %v1366_v32 }
 0x10e   :  { %v444_v43 = vperm.slane %v435_v36, 0 }
 0x110   :  { %v446_v40 = vadd.f32 %v444_v43, %v439_v38  ;;  %v447_v44 = vadd.f32 %v444_v43, %v440_v39  ;;  %v448_v45 = vadd.f32 %v444_v43, %v441_v41  ;;  %v449_v46 = vadd.f32 %v444_v43, %v442_v42 }
 0x112   :  { %v450_v47 = vmax.f32 %v446_v40, 0.0  ;;  %v451_v26 = vmax.f32 %v447_v44, 0.0  ;;  %v452_v48 = vmax.f32 %v448_v45, 0.0  ;;  %v453_v49 = vmax.f32 %v449_v46, 0.0 }
 0x114   :  { %v454_v23 = vpack.c.bf16 %v450_v47, %v450_v47  ;;  %v455_v27 = vpack.c.bf16 %v451_v26, %v451_v26  ;;  %v456_v32 = vpack.c.bf16 %v452_v48, %v452_v48  ;;  %v457_v50 = vpack.c.bf16 %v453_v49, %v453_v49 }
 0x116   :  { %v461_v51 = vshrl.u32 %v454_v23, 16  ;;  %v469_v52 = vshrl.u32 %v455_v27, 16  ;;  %v478_v53 = vshrl.u32 %v456_v32, 16  ;;  %v486_v54 = vshrl.u32 %v457_v50, 16 }
 0x117   :  { %v464_v57 = vshll.u32 %v454_v23, 16  ;;  %v472_v59 = vshll.u32 %v455_v27, 16  ;;  %v481_v62 = vshll.u32 %v456_v32, 16  ;;  %v489_v0 = vshll.u32 %v457_v50, 16 }
 0x118   :  { %v463_v56 = vrot.slane %v461_v51, 7  ;;  %v471_v58 = vrot.slane %v469_v52, 7  ;;  %v480_v61 = vrot.slane %v478_v53, 7  ;;  %v488_v63 = vrot.slane %v486_v54, 7 }
 0x11a   :  { %v466_v4 = vor.u32 %v464_v57, %v463_v56  ;;  %v467_v5 = vrot.slane %v463_v56, 4  ;;  %v474_v6 = vor.u32 %v472_v59, %v471_v58  ;;  %v476_v7 = vrot.slane %v471_v58, 4 }
 0x11b   :  { %v483_v9 = vor.u32 %v481_v62, %v480_v61  ;;  %v484_v10 = vrot.slane %v480_v61, 4  ;;  %v491_v11 = vor.u32 %v489_v0, %v488_v63  ;;  %v493_v12 = vrot.slane %v488_v63, 4 }
 0x11c   :  { %v475_v13 = vsel %vm1415_vm12, %v467_v5, %v474_v6  ;;  %v503_v15 = vsel %vm1420_vm13, %v466_v4, %v502_v60  ;;  %v507_v16 = vsel %vm1348_vm4, %v476_v7, %v506_v2 }
 0x11d   :  { %504 = vst [vmem:[#allocation2] sm:$0xf] %v503_v15  ;;  %v510_v18 = vsel %vm1420_vm13, %v483_v9, %v509_v8  ;;  %v492_v14 = vsel %vm1415_vm12, %v484_v10, %v491_v11  ;;  %v514_v20 = vsel %vm1348_vm4, %v493_v12, %v513_v17 }
 0x11e   :  { %505 = vst [vmem:[#allocation2 + $0x4] sm:$0xf] %v475_v13 }
 0x11f   :  { %508 = vst [vmem:[#allocation2 + $0x8] sm:$0x1] %v507_v16 }
 0x120   :  { %511 = vst [vmem:[#allocation2 + $0xc] sm:$0xf] %v510_v18 }
 0x121   :  { %512 = vst [vmem:[#allocation2 + $0x10] sm:$0xf] %v492_v14 }
 0x122   :  { %515 = vst [vmem:[#allocation2 + $0x14] sm:$0x1] %v514_v20 }
 0x125   :  { %v1141_v21 = vld [vmem:[#allocation2] sm:$0xff] }
 0x126   :  { %v518_v22 = vld [vmem:[#allocation2 + $0x8] sm:$0x1]  ;;  %774 = vmatmul.bf16.vlgmr.msra.gmra.mxu3 %v1141_v21  ;;  %v543_v25 = vshll.u32 %v1141_v21, 16  ;;  %v541_v31 = vshrl.u32 %v1141_v21, 16  ;;  %v566_v36 = vrot.slane %v1141_v21, 1 }
 0x127   :  { %v536_v24 = vunpack.c.l.b16 %v518_v22 }
 0x128   :  { %v1142_v29 = vld [vmem:[#allocation2 + $0xc] sm:$0xff]  ;;  %v545_v19 = vrot.slane %v543_v25, 1 }
 0x129   :  { %v538_v30 = vpack.c.b16 %v536_v24, %v536_v24  ;;  %v521_v33 = vld [vmem:[#allocation2 + $0x14] sm:$0x1]  ;;  %v555_v3 = vshll.u32 %v1142_v29, 16  ;;  %v553_v28 = vshrl.u32 %v1142_v29, 16  ;;  %v569_v48 = vrot.slane %v1142_v29, 1 }
 0x12a   :  { %v537_v34 = vunpack.c.l.b16 %v521_v33  ;;  %v546_v38 = vor.u32 %v545_v19, %v541_v31 }
 0x12b   :  { %v567_v37 = vrot.slane %v538_v30, 1  ;;  %v548_v39 = vshll.u32 %v538_v30, 16  ;;  %v557_v42 = vrot.slane %v555_v3, 1 }
 0x12c   :  { %v539_v41 = vpack.c.b16 %v537_v34, %v537_v34 }
 0x12d   :  { %v568_v43 = vsel %vm134_vm1, %v566_v36, %v567_v37  ;;  %v550_v35 = vrot.slane %v548_v39, 1  ;;  %v558_v40 = vor.u32 %v557_v42, %v553_v28 }
 0x12e   :  { %812 = vmatmul.bf16.vlgmr.msrb.gmra.mxu1 %v568_v43  ;;  %v560_v44 = vshll.u32 %v539_v41, 16  ;;  %v570_v26 = vrot.slane %v539_v41, 1  ;;  %v851_v43 = vld [vmem:[%s1470_s5] sm:$0x1] }
 0x12f   :  { %v551_v45 = vsel %vm107_vm0, %v546_v38, %v550_v35 }
 0x130   :  { %793 = vmatmul.bf16.vlgmr.msrb.gmra.mxu0 %v551_v45  ;;  %v562_v46 = vrot.slane %v560_v44, 1  ;;  %v571_v49 = vsel %vm134_vm1, %v569_v48, %v570_v26  ;;  %v864_v45 = vld [vmem:[%s1471_s6] sm:$0x1] }
 0x132   :  { %v563_v47 = vsel %vm107_vm0, %v558_v40, %v562_v46 }
 0x133   :  { %798 = vmatmul.bf16.vlgmr.msrb.gmra.mxu2 %v563_v47 }
 0x136   :  { %779 = vmatmul.bf16.gmra.mxu3 %v1142_v29 }
 0x146   :  { %817 = vmatmul.bf16.vlgmr.msrb.gmra.mxu3 %v571_v49 }
 0x1a9   :  { %v775_v23 = vpop.f32.mrf.mxu3 }
 0x1ab   :  { %v813_v51 = vpop.f32.mrf.mxu1 }
 0x1ad   :  { %v794_v50 = vpop.f32.mrf.mxu0 }
 0x1ae   :  { %v795_v57 = vadd.f32 %v794_v50, %v775_v23  ;;  %v884_v50 = vld [vmem:[%s1465_s0 + $0x21] sm:$0xff] }
 0x1b0   :  { %v814_v61 = vadd.f32 %v813_v51, %v795_v57  ;;  %v881_v51 = vld [vmem:[%s1465_s0 + $0x1] sm:$0xff] }
 0x1b1   :  { %v777_v27 = vpop.f32.mrf.mxu3 }
 0x1b3   :  { %v815_v58 = vpop.f32.mrf.mxu1 }
 0x1b5   :  { %v796_v54 = vpop.f32.mrf.mxu0 }
 0x1b6   :  { %v799_v53 = vpop.f32.mrf.mxu2  ;;  %v797_v55 = vadd.f32 %v796_v54, %v777_v27 }
 0x1b8   :  { %v816_v59 = vadd.f32 %v815_v58, %v797_v55 }
 0x1b9   :  { %v780_v32 = vpop.f32.mrf.mxu3 }
 0x1ba   :  { %v800_v60 = vadd.f32 %v799_v53, %v780_v32  ;;  %v823_v1 = vadd.f32 %v816_v59, %v814_v61  ;;  %v883_v53 = vld [vmem:[%s1465_s0 + $0x19] sm:$0xff] }
 0x1be   :  { %v801_v63 = vpop.f32.mrf.mxu2 }
 0x1c1   :  { %v782_v52 = vpop.f32.mrf.mxu3 }
 0x1c2   :  { %v802_v0 = vadd.f32 %v801_v63, %v782_v52  ;;  %v882_v52 = vld [vmem:[%s1465_s0 + $0x9] sm:$0xff]  ;;  %s1277_s0 = smov 128  }
 0x1c9   :  { %v818_v56 = vpop.f32.mrf.mxu3 }
 0x1ca   :  { %v819_v62 = vadd.f32 %v818_v56, %v800_v60 }
 0x1cc   :  { %v824_v4 = vadd.f32 %v823_v1, %v819_v62 }
 0x1d1   :  { %v820_v2 = vpop.f32.mrf.mxu3 }
 0x1d2   :  { %v821_v5 = vadd.f32 %v820_v2, %v802_v0 }
 0x1d4   :  { %v825_v6 = vadd.f32 %v824_v4, %v821_v5 }
 0x1d6   :  { %v826_v7 = vrot.slane %v825_v6, 4 }
 0x1d8   :  { %v827_v8 = vadd.f32 %v826_v7, %v825_v6 }
 0x1da   :  { %v828_v9 = vrot.slane %v827_v8, 2 }
 0x1dc   :  { %v829_v10 = vadd.f32 %v828_v9, %v827_v8 }
 0x1de   :  { %v830_v11 = vrot.slane %v829_v10, 1 }
 0x1e0   :  { %v831_v12 = vadd.f32 %v830_v11, %v829_v10 }
 0x1e2   :  { %v832_v13 = vmul.f32 0.03125, %v831_v12 }
 0x1e4   :  { %v833_v15 = vsub.f32 %v814_v61, %v832_v13  ;;  %v834_v16 = vsub.f32 %v816_v59, %v832_v13  ;;  %v835_v17 = vsub.f32 %v819_v62, %v832_v13  ;;  %v836_v18 = vsub.f32 %v821_v5, %v832_v13 }
 0x1e6   :  { %v837_v14 = vmul.f32 %v833_v15, %v833_v15  ;;  %v838_v20 = vmul.f32 %v834_v16, %v834_v16  ;;  %v839_v21 = vmul.f32 %v835_v17, %v835_v17  ;;  %v840_v24 = vmul.f32 %v836_v18, %v836_v18 }
 0x1e8   :  { %v841_v22 = vadd.f32 %v838_v20, %v837_v14 }
 0x1ea   :  { %v842_v25 = vadd.f32 %v841_v22, %v839_v21 }
 0x1ec   :  { %v843_v29 = vadd.f32 %v842_v25, %v840_v24 }
 0x1ee   :  { %v844_v30 = vrot.slane %v843_v29, 4 }
 0x1f0   :  { %v845_v31 = vadd.f32 %v844_v30, %v843_v29 }
 0x1f2   :  { %v846_v19 = vrot.slane %v845_v31, 2 }
 0x1f4   :  { %v847_v33 = vadd.f32 %v846_v19, %v845_v31 }
 0x1f6   :  { %v848_v34 = vrot.slane %v847_v33, 1 }
 0x1f8   :  { %v849_v3 = vadd.f32 %v848_v34, %v847_v33 }
 0x1fa   :  { %v850_v36 = vmul.f32 0.03125, %v849_v3 }
 0x1fc   :  { %v852_v37 = vadd.f32 1e-05, %v850_v36 }
 0x1fe   :  { %1192 = vrsqrt.f32 %v852_v37  ;;  %vm859_vm15 = vweird.f32 %v852_v37 }
 0x204   :  { %v1193_v38 = vpop.eup %1192 }
 0x205   :  { %v854_v39 = vmul.f32 %v1193_v38, %v852_v37  ;;  %vm860_vm14 = vweird.f32 %v1193_v38 }
 0x206   :  { %vm861_vm0 = vmor %vm859_vm15, %vm860_vm14 }
 0x207   :  { %v855_v41 = vmul.f32 %v1193_v38, %v854_v39 }
 0x209   :  { %v856_v28 = vmul.f32 0.5, %v855_v41 }
 0x20b   :  { %v857_v42 = vsub.f32 1.5, %v856_v28 }
 0x20d   :  { %v858_v35 = vmul.f32 %v1193_v38, %v857_v42 }
 0x20f   :  { %v862_v40 = vsel %vm861_vm0, %v1193_v38, %v858_v35 }
 0x210   :  { %v863_v44 = vmul.f32 %v862_v40, %v851_v43 }
 0x212   :  { %v865_v46 = vmul.f32 %v863_v44, %v832_v13  ;;  %v868_v47 = vperm.slane %v863_v44, 0 }
 0x214   :  { %v866_v26 = vsub.f32 %v864_v45, %v865_v46  ;;  %v870_v48 = vmul.f32 %v868_v47, %v814_v61  ;;  %v871_v49 = vmul.f32 %v868_v47, %v816_v59  ;;  %v872_v23 = vmul.f32 %v868_v47, %v819_v62 }
 0x215   :  { %v873_v27 = vmul.f32 %v868_v47, %v821_v5 }
 0x216   :  { %v875_v32 = vperm.slane %v866_v26, 0 }
 0x218   :  { %v877_v54 = vadd.f32 %v875_v32, %v870_v48  ;;  %v878_v55 = vadd.f32 %v875_v32, %v871_v49  ;;  %v879_v56 = vadd.f32 %v875_v32, %v872_v23  ;;  %v880_v57 = vadd.f32 %v875_v32, %v873_v27 }
 0x21a   :  { %v888_v58 = vadd.f32 %v884_v50, %v880_v57  ;;  %v885_v59 = vadd.f32 %v881_v51, %v877_v54  ;;  %v886_v60 = vadd.f32 %v882_v52, %v878_v55  ;;  %v887_v61 = vadd.f32 %v883_v53, %v879_v56 }
 0x21c   :  { %v892_v62 = vmax.f32 %v888_v58, 0.0  ;;  %v889_v63 = vmax.f32 %v885_v59, 0.0  ;;  %v890_v0 = vmax.f32 %v886_v60, 0.0  ;;  %v891_v1 = vmax.f32 %v887_v61, 0.0 }
 0x21e   :  { %896 = vst [vmem:[#allocation8 + $0x18] sm:$0xff] %v892_v62 }
 0x21f   :  { %893 = vst [vmem:[#allocation8] sm:$0xff] %v889_v63 }
 0x220   :  { %894 = vst [vmem:[#allocation8 + $0x8] sm:$0xff] %v890_v0 }
 0x221   :  { %895 = vst [vmem:[#allocation8 + $0x10] sm:$0xff] %v891_v1 }
 0x222   :  { %909 = dma.vmem_to_hbm [thread:$0]  %s902_s1, 512, %s904_s14, [#allocation5], %s1277_s0, %s1277_s0, %s1278_s15  }
 0x223   :  { %1270 = dma.done.wait [#allocation5], 512  }
 0x224   :  { %1271 = vsyncadd [#allocation5], 4294966784 }
 0x225   :  { %914 = vsyncpa [#allocation4], 1 }
 0x226   :  { %915 = vsyncpa [#allocation7], 1 }
 0x227   :  { %916 = vsyncpa [#allocation5], 1 }

</bundles_post_ra>
